<compile_context>
chip_gen: v6e
topology: v6e:2x2x1
jax: 0.10.0
libtpu: 0.0.40
codegen_flags: <defaults>
</compile_context>

<pallas_src>
import jax
import jax.numpy as jnp
from jax import lax
from jax.experimental import pallas as pl
from jax.experimental.pallas import tpu as pltpu


# ---------------------------------------------------------------------------
# Fused kernel
#   x_ref   : (128, 16) f32 VMEM   -- x1 flattened row-major: row = c*16 + h
#   w1t_ref : (8, 18)   f32 VMEM   -- fc weight^T zero-embedded at cols 1..16
#   b1_ref  : (1, 18)   f32 VMEM   -- fc bias zero-embedded at cols 1..16
#   w2_ref  : (2, 4)    f32 SMEM   -- 1x1 conv weight (scalar reads)
#   b2_ref  : (2,)      f32 SMEM   -- conv bias (scalar reads)
#   o_ref   : (2,18,18) f32 VMEM   -- v6 (padded conv output + residual)
# ---------------------------------------------------------------------------
def fused_model_kernel(x_ref, w1t_ref, b1_ref, w2_ref, b2_ref, o_ref):
    f32 = jnp.float32
    X2 = x_ref[...]                                          # (128, 16)

    # ---- MaxPool2d(2), W direction: even/odd column selection via matmuls ----
    w_i = lax.broadcasted_iota(jnp.int32, (16, 8), 0)
    j_i = lax.broadcasted_iota(jnp.int32, (16, 8), 1)
    E0 = jnp.where(w_i == 2 * j_i, 1.0, 0.0).astype(f32)     # picks col 2j
    E1 = jnp.where(w_i == 2 * j_i + 1, 1.0, 0.0).astype(f32) # picks col 2j+1
    pw = jnp.maximum(jnp.dot(X2, E0, preferred_element_type=f32),
                     jnp.dot(X2, E1, preferred_element_type=f32))   # (128, 8)

    # ---- MaxPool2d(2), H direction + row compaction via row-selection matmuls
    r_i = lax.broadcasted_iota(jnp.int32, (64, 128), 0)
    s_i = lax.broadcasted_iota(jnp.int32, (64, 128), 1)
    R0 = jnp.where(s_i == 2 * r_i, 1.0, 0.0).astype(f32)     # picks row 2r
    R1 = jnp.where(s_i == 2 * r_i + 1, 1.0, 0.0).astype(f32) # picks row 2r+1
    pooled = jnp.maximum(jnp.dot(R0, pw, preferred_element_type=f32),
                         jnp.dot(R1, pw, preferred_element_type=f32))  # (64, 8)

    # ---- Linear(8,16) + LeakyReLU(0.2), already shifted into cols 1..16 of an
    # 18-wide frame (cols 0 and 17 stay exactly 0 because leaky_relu(0) == 0) --
    y = jnp.dot(pooled, w1t_ref[...], preferred_element_type=f32) + b1_ref[...]
    v3 = jnp.where(y > 0, y, 0.2 * y)                        # (64, 18)

    # column-shift matrix for the residual: x column w -> frame column w+1
    a_i = lax.broadcasted_iota(jnp.int32, (16, 18), 0)
    c_i = lax.broadcasted_iota(jnp.int32, (16, 18), 1)
    CS = jnp.where(c_i == a_i + 1, 1.0, 0.0).astype(f32)     # (16, 18)
    # row-shift matrix: interior row a -> frame row a+1 (frame rows 0,17 -> 0)
    rr = lax.broadcasted_iota(jnp.int32, (18, 16), 0)
    cc = lax.broadcasted_iota(jnp.int32, (18, 16), 1)
    RS = jnp.where(rr == cc + 1, 1.0, 0.0).astype(f32)       # (18, 16)

    # ---- 1x1 conv (VPU FMAs) + residual + padded-output assembly -------------
    # TODO(synk): original `v6 = v5 + x1` is shape-incompatible ((1,2,18,18) vs
    # (1,8,16,16)); we add the first 2 channels of x1 onto the non-padded 16x16
    # interior of the conv output instead.
    for o in range(2):
        # residual = first-2-channel slice of x, shifted into frame columns
        acc = jnp.dot(X2[16 * o:16 * (o + 1), :], CS,
                      preferred_element_type=f32)            # (16, 18)
        # v4 = v3.reshape(4,16,16): channel cp is rows [16cp, 16cp+16) of v3
        for cp in range(4):
            acc = acc + w2_ref[o, cp] * v3[16 * cp:16 * (cp + 1), :]
        # embed interior at rows 1..16; border rows/cols end up as just b2[o]
        full = jnp.dot(RS, acc, preferred_element_type=f32) + b2_ref[o]  # (18,18)
        o_ref[o, :, :] = full


def model_forward(x1, w1, b1, w2, b2):
    # v1 = dropout(x1)  -> eval-mode dropout == identity (no-op)
    X2 = x1.reshape(128, 16).astype(jnp.float32)             # free reshape

    # tiny one-time parameter embeddings (18-wide frame, zero border columns)
    w1t18 = jnp.zeros((8, 18), jnp.float32).at[:, 1:17].set(w1.T)
    b1_18 = jnp.zeros((1, 18), jnp.float32).at[:, 1:17].set(b1.reshape(1, 16))
    w2m = w2.reshape(2, 4).astype(jnp.float32)
    b2v = b2.astype(jnp.float32)

    vmem = pl.BlockSpec(memory_space=pltpu.MemorySpace.VMEM)
    smem = pl.BlockSpec(memory_space=pltpu.MemorySpace.SMEM)

    # TODO(synk): original reshape target (1,4,28,28) needs 3136 elements which
    # is unreachable from any input compatible with Linear(8,16); we keep the
    # intended 4-channel layout with (16,16) spatial (handled inside the kernel
    # by row-block indexing of v3).
    out = pl.pallas_call(
        fused_model_kernel,
        out_shape=jax.ShapeDtypeStruct((2, 18, 18), jnp.float32),
        in_specs=[vmem, vmem, vmem, smem, smem],
        out_specs=vmem,
    )(X2, w1t18, b1_18, w2m, b2v)
    return out[None]                                         # (1, 2, 18, 18)


def reference_forward(x1, w1, b1, w2, b2):
    """Pure-JAX reference mirroring the same (shape-repaired) semantics."""
    x = x1[0]
    v2 = x.reshape(8, 8, 2, 8, 2).max(axis=(2, 4))                     # maxpool
    v3 = jnp.einsum("chw,ow->cho", v2, w1) + b1                        # fc
    v3 = jnp.where(v3 > 0, v3, 0.2 * v3)                               # leaky relu
    v4 = v3.reshape(4, 16, 16)
    conv = jnp.einsum("oc,chw->ohw", w2.reshape(2, 4), v4)             # 1x1 conv
    interior = conv + b2.reshape(2, 1, 1) + x[:2]
    full = jnp.broadcast_to(b2.reshape(2, 1, 1), (2, 18, 18))
    full = full.at[:, 1:17, 1:17].set(interior)
    return full[None]


if __name__ == "__main__":
    key = jax.random.PRNGKey(0)
    k1, k2, k3, k4, k5 = jax.random.split(key, 5)

    # Parameters (deterministic init, shapes from the module's __init__)
    w1 = 0.1 * jax.random.normal(k1, (16, 8), jnp.float32)        # fc.weight
    b1 = 0.1 * jax.random.normal(k2, (16,), jnp.float32)          # fc.bias
    w2 = 0.1 * jax.random.normal(k3, (2, 4, 1, 1), jnp.float32)   # conv2.weight
    b2 = 0.1 * jax.random.normal(k4, (2,), jnp.float32)           # conv2.bias

    # Input (NCHW); width chosen so that Linear(8,16) applies after MaxPool2d(2)
    x1 = jax.random.normal(k5, (1, 8, 16, 16), jnp.float32)

    out = jax.jit(model_forward)(x1, w1, b1, w2, b2)
    out = jax.block_until_ready(out)

    ref = reference_forward(x1, w1, b1, w2, b2)
    assert out.shape == (1, 2, 18, 18), out.shape
    assert jnp.allclose(out, ref, rtol=2e-3, atol=2e-3), "mismatch vs reference"

    print("KERNEL_OK")
</pallas_src>

<mosaic_0001>
module attributes {stable_mosaic.version = 11 : i64} {
  func.func @fused_model_kernel(%arg0: memref<128x16xf32, #tpu.memory_space<vmem>>, %arg1: memref<8x18xf32, #tpu.memory_space<vmem>>, %arg2: memref<1x18xf32, #tpu.memory_space<vmem>>, %arg3: memref<2x4xf32, #tpu.memory_space<smem>>, %arg4: memref<2xf32, #tpu.memory_space<smem>>, %arg5: memref<2x18x18xf32, #tpu.memory_space<vmem>>) attributes {dimension_semantics = [], scalar_prefetch = 0 : i64, scratch_operands = 0 : i64, tpu.core_type = #tpu.core_type<tc>} {
    %c0 = arith.constant 0 : index
    %c0_0 = arith.constant 0 : index
    %0 = vector.load %arg0[%c0, %c0_0] : memref<128x16xf32, #tpu.memory_space<vmem>>, vector<128x16xf32>
    %1 = tpu.iota {dimensions = array<i32: 0>} : vector<16x8xi32>
    %2 = tpu.iota {dimensions = array<i32: 1>} : vector<16x8xi32>
    %c2_i32 = arith.constant 2 : i32
    %3 = vector.broadcast %c2_i32 : i32 to vector<16x8xi32>
    %4 = arith.muli %3, %2 : vector<16x8xi32>
    %5 = arith.cmpi eq, %1, %4 : vector<16x8xi32>
    %cst = arith.constant 1.000000e+00 : f32
    %cst_1 = arith.constant 0.000000e+00 : f32
    %6 = vector.broadcast %cst : f32 to vector<16x8xf32>
    %7 = vector.broadcast %cst_1 : f32 to vector<16x8xf32>
    %8 = arith.select %5, %6, %7 : vector<16x8xi1>, vector<16x8xf32>
    %c2_i32_2 = arith.constant 2 : i32
    %9 = vector.broadcast %c2_i32_2 : i32 to vector<16x8xi32>
    %10 = arith.muli %9, %2 : vector<16x8xi32>
    %c1_i32 = arith.constant 1 : i32
    %11 = vector.broadcast %c1_i32 : i32 to vector<16x8xi32>
    %12 = arith.addi %10, %11 : vector<16x8xi32>
    %13 = arith.cmpi eq, %1, %12 : vector<16x8xi32>
    %cst_3 = arith.constant 1.000000e+00 : f32
    %cst_4 = arith.constant 0.000000e+00 : f32
    %14 = vector.broadcast %cst_3 : f32 to vector<16x8xf32>
    %15 = vector.broadcast %cst_4 : f32 to vector<16x8xf32>
    %16 = arith.select %13, %14, %15 : vector<16x8xi1>, vector<16x8xf32>
    %cst_5 = arith.constant dense<0.000000e+00> : vector<128x8xf32>
    %17 = tpu.matmul %0, %8, %cst_5 {dimension_numbers = #tpu.dot_dimension_numbers<[1], [0], [0], [1], [0, 0, 1, 1], [], []>} : vector<128x16xf32>, vector<16x8xf32>, vector<128x8xf32> -> vector<128x8xf32>
    %cst_6 = arith.constant dense<0.000000e+00> : vector<128x8xf32>
    %18 = tpu.matmul %0, %16, %cst_6 {dimension_numbers = #tpu.dot_dimension_numbers<[1], [0], [0], [1], [0, 0, 1, 1], [], []>} : vector<128x16xf32>, vector<16x8xf32>, vector<128x8xf32> -> vector<128x8xf32>
    %19 = arith.maximumf %17, %18 : vector<128x8xf32>
    %20 = tpu.iota {dimensions = array<i32: 0>} : vector<64x128xi32>
    %21 = tpu.iota {dimensions = array<i32: 1>} : vector<64x128xi32>
    %c2_i32_7 = arith.constant 2 : i32
    %22 = vector.broadcast %c2_i32_7 : i32 to vector<64x128xi32>
    %23 = arith.muli %22, %20 : vector<64x128xi32>
    %24 = arith.cmpi eq, %21, %23 : vector<64x128xi32>
    %cst_8 = arith.constant 1.000000e+00 : f32
    %cst_9 = arith.constant 0.000000e+00 : f32
    %25 = vector.broadcast %cst_8 : f32 to vector<64x128xf32>
    %26 = vector.broadcast %cst_9 : f32 to vector<64x128xf32>
    %27 = arith.select %24, %25, %26 : vector<64x128xi1>, vector<64x128xf32>
    %c2_i32_10 = arith.constant 2 : i32
    %28 = vector.broadcast %c2_i32_10 : i32 to vector<64x128xi32>
    %29 = arith.muli %28, %20 : vector<64x128xi32>
    %c1_i32_11 = arith.constant 1 : i32
    %30 = vector.broadcast %c1_i32_11 : i32 to vector<64x128xi32>
    %31 = arith.addi %29, %30 : vector<64x128xi32>
    %32 = arith.cmpi eq, %21, %31 : vector<64x128xi32>
    %cst_12 = arith.constant 1.000000e+00 : f32
    %cst_13 = arith.constant 0.000000e+00 : f32
    %33 = vector.broadcast %cst_12 : f32 to vector<64x128xf32>
    %34 = vector.broadcast %cst_13 : f32 to vector<64x128xf32>
    %35 = arith.select %32, %33, %34 : vector<64x128xi1>, vector<64x128xf32>
    %cst_14 = arith.constant dense<0.000000e+00> : vector<64x8xf32>
    %36 = tpu.matmul %27, %19, %cst_14 {dimension_numbers = #tpu.dot_dimension_numbers<[1], [0], [0], [1], [0, 0, 1, 1], [], []>} : vector<64x128xf32>, vector<128x8xf32>, vector<64x8xf32> -> vector<64x8xf32>
    %cst_15 = arith.constant dense<0.000000e+00> : vector<64x8xf32>
    %37 = tpu.matmul %35, %19, %cst_15 {dimension_numbers = #tpu.dot_dimension_numbers<[1], [0], [0], [1], [0, 0, 1, 1], [], []>} : vector<64x128xf32>, vector<128x8xf32>, vector<64x8xf32> -> vector<64x8xf32>
    %38 = arith.maximumf %36, %37 : vector<64x8xf32>
    %c0_16 = arith.constant 0 : index
    %c0_17 = arith.constant 0 : index
    %39 = vector.load %arg1[%c0_16, %c0_17] : memref<8x18xf32, #tpu.memory_space<vmem>>, vector<8x18xf32>
    %cst_18 = arith.constant dense<0.000000e+00> : vector<64x18xf32>
    %40 = tpu.matmul %38, %39, %cst_18 {dimension_numbers = #tpu.dot_dimension_numbers<[1], [0], [0], [1], [0, 0, 1, 1], [], []>} : vector<64x8xf32>, vector<8x18xf32>, vector<64x18xf32> -> vector<64x18xf32>
    %c0_19 = arith.constant 0 : index
    %c0_20 = arith.constant 0 : index
    %41 = vector.load %arg2[%c0_19, %c0_20] : memref<1x18xf32, #tpu.memory_space<vmem>>, vector<1x18xf32>
    %42 = vector.broadcast %41 : vector<1x18xf32> to vector<64x18xf32>
    %43 = arith.addf %40, %42 : vector<64x18xf32>
    %cst_21 = arith.constant 0.000000e+00 : f32
    %44 = vector.broadcast %cst_21 : f32 to vector<64x18xf32>
    %45 = arith.cmpf ogt, %43, %44 : vector<64x18xf32>
    %cst_22 = arith.constant 2.000000e-01 : f32
    %46 = vector.broadcast %cst_22 : f32 to vector<64x18xf32>
    %47 = arith.mulf %46, %43 : vector<64x18xf32>
    %48 = arith.select %45, %43, %47 : vector<64x18xi1>, vector<64x18xf32>
    %49 = tpu.iota {dimensions = array<i32: 0>} : vector<16x18xi32>
    %50 = tpu.iota {dimensions = array<i32: 1>} : vector<16x18xi32>
    %c1_i32_23 = arith.constant 1 : i32
    %51 = vector.broadcast %c1_i32_23 : i32 to vector<16x18xi32>
    %52 = arith.addi %49, %51 : vector<16x18xi32>
    %53 = arith.cmpi eq, %50, %52 : vector<16x18xi32>
    %cst_24 = arith.constant 1.000000e+00 : f32
    %cst_25 = arith.constant 0.000000e+00 : f32
    %54 = vector.broadcast %cst_24 : f32 to vector<16x18xf32>
    %55 = vector.broadcast %cst_25 : f32 to vector<16x18xf32>
    %56 = arith.select %53, %54, %55 : vector<16x18xi1>, vector<16x18xf32>
    %57 = tpu.iota {dimensions = array<i32: 0>} : vector<18x16xi32>
    %58 = tpu.iota {dimensions = array<i32: 1>} : vector<18x16xi32>
    %c1_i32_26 = arith.constant 1 : i32
    %59 = vector.broadcast %c1_i32_26 : i32 to vector<18x16xi32>
    %60 = arith.addi %58, %59 : vector<18x16xi32>
    %61 = arith.cmpi eq, %57, %60 : vector<18x16xi32>
    %cst_27 = arith.constant 1.000000e+00 : f32
    %cst_28 = arith.constant 0.000000e+00 : f32
    %62 = vector.broadcast %cst_27 : f32 to vector<18x16xf32>
    %63 = vector.broadcast %cst_28 : f32 to vector<18x16xf32>
    %64 = arith.select %61, %62, %63 : vector<18x16xi1>, vector<18x16xf32>
    %65 = vector.extract_strided_slice %0 {offsets = [0, 0], sizes = [16, 16], strides = [1, 1]} : vector<128x16xf32> to vector<16x16xf32>
    %cst_29 = arith.constant dense<0.000000e+00> : vector<16x18xf32>
    %66 = tpu.matmul %65, %56, %cst_29 {dimension_numbers = #tpu.dot_dimension_numbers<[1], [0], [0], [1], [0, 0, 1, 1], [], []>} : vector<16x16xf32>, vector<16x18xf32>, vector<16x18xf32> -> vector<16x18xf32>
    %c0_30 = arith.constant 0 : index
    %c0_31 = arith.constant 0 : index
    %67 = memref.load %arg3[%c0_30, %c0_31] : memref<2x4xf32, #tpu.memory_space<smem>>
    %68 = vector.extract_strided_slice %48 {offsets = [0, 0], sizes = [16, 18], strides = [1, 1]} : vector<64x18xf32> to vector<16x18xf32>
    %69 = vector.broadcast %67 : f32 to vector<16x18xf32>
    %70 = arith.mulf %69, %68 : vector<16x18xf32>
    %71 = arith.addf %66, %70 : vector<16x18xf32>
    %c0_32 = arith.constant 0 : index
    %c1 = arith.constant 1 : index
    %72 = memref.load %arg3[%c0_32, %c1] : memref<2x4xf32, #tpu.memory_space<smem>>
    %73 = vector.extract_strided_slice %48 {offsets = [16, 0], sizes = [16, 18], strides = [1, 1]} : vector<64x18xf32> to vector<16x18xf32>
    %74 = vector.broadcast %72 : f32 to vector<16x18xf32>
    %75 = arith.mulf %74, %73 : vector<16x18xf32>
    %76 = arith.addf %71, %75 : vector<16x18xf32>
    %c0_33 = arith.constant 0 : index
    %c2 = arith.constant 2 : index
    %77 = memref.load %arg3[%c0_33, %c2] : memref<2x4xf32, #tpu.memory_space<smem>>
    %78 = vector.extract_strided_slice %48 {offsets = [32, 0], sizes = [16, 18], strides = [1, 1]} : vector<64x18xf32> to vector<16x18xf32>
    %79 = vector.broadcast %77 : f32 to vector<16x18xf32>
    %80 = arith.mulf %79, %78 : vector<16x18xf32>
    %81 = arith.addf %76, %80 : vector<16x18xf32>
    %c0_34 = arith.constant 0 : index
    %c3 = arith.constant 3 : index
    %82 = memref.load %arg3[%c0_34, %c3] : memref<2x4xf32, #tpu.memory_space<smem>>
    %83 = vector.extract_strided_slice %48 {offsets = [48, 0], sizes = [16, 18], strides = [1, 1]} : vector<64x18xf32> to vector<16x18xf32>
    %84 = vector.broadcast %82 : f32 to vector<16x18xf32>
    %85 = arith.mulf %84, %83 : vector<16x18xf32>
    %86 = arith.addf %81, %85 : vector<16x18xf32>
    %cst_35 = arith.constant dense<0.000000e+00> : vector<18x18xf32>
    %87 = tpu.matmul %64, %86, %cst_35 {dimension_numbers = #tpu.dot_dimension_numbers<[1], [0], [0], [1], [0, 0, 1, 1], [], []>} : vector<18x16xf32>, vector<16x18xf32>, vector<18x18xf32> -> vector<18x18xf32>
    %c0_36 = arith.constant 0 : index
    %88 = memref.load %arg4[%c0_36] : memref<2xf32, #tpu.memory_space<smem>>
    %89 = vector.broadcast %88 : f32 to vector<18x18xf32>
    %90 = arith.addf %87, %89 : vector<18x18xf32>
    %c0_37 = arith.constant 0 : index
    %c0_38 = arith.constant 0 : index
    %c0_39 = arith.constant 0 : index
    %91 = vector.load %arg5[%c0_37, %c0_38, %c0_39] : memref<2x18x18xf32, #tpu.memory_space<vmem>>, vector<1x18x18xf32>
    %92 = vector.shape_cast %91 : vector<1x18x18xf32> to vector<18x18xf32>
    %93 = vector.shape_cast %90 : vector<18x18xf32> to vector<1x18x18xf32>
    tpu.vector_store %arg5[%c0_37, %c0_38, %c0_39], %93 {strides = array<i32>} : memref<2x18x18xf32, #tpu.memory_space<vmem>>, vector<1x18x18xf32>,
    %94 = vector.extract_strided_slice %0 {offsets = [16, 0], sizes = [16, 16], strides = [1, 1]} : vector<128x16xf32> to vector<16x16xf32>
    %cst_40 = arith.constant dense<0.000000e+00> : vector<16x18xf32>
    %95 = tpu.matmul %94, %56, %cst_40 {dimension_numbers = #tpu.dot_dimension_numbers<[1], [0], [0], [1], [0, 0, 1, 1], [], []>} : vector<16x16xf32>, vector<16x18xf32>, vector<16x18xf32> -> vector<16x18xf32>
    %c1_41 = arith.constant 1 : index
    %c0_42 = arith.constant 0 : index
    %96 = memref.load %arg3[%c1_41, %c0_42] : memref<2x4xf32, #tpu.memory_space<smem>>
    %97 = vector.extract_strided_slice %48 {offsets = [0, 0], sizes = [16, 18], strides = [1, 1]} : vector<64x18xf32> to vector<16x18xf32>
    %98 = vector.broadcast %96 : f32 to vector<16x18xf32>
    %99 = arith.mulf %98, %97 : vector<16x18xf32>
    %100 = arith.addf %95, %99 : vector<16x18xf32>
    %c1_43 = arith.constant 1 : index
    %c1_44 = arith.constant 1 : index
    %101 = memref.load %arg3[%c1_43, %c1_44] : memref<2x4xf32, #tpu.memory_space<smem>>
    %102 = vector.extract_strided_slice %48 {offsets = [16, 0], sizes = [16, 18], strides = [1, 1]} : vector<64x18xf32> to vector<16x18xf32>
    %103 = vector.broadcast %101 : f32 to vector<16x18xf32>
    %104 = arith.mulf %103, %102 : vector<16x18xf32>
    %105 = arith.addf %100, %104 : vector<16x18xf32>
    %c1_45 = arith.constant 1 : index
    %c2_46 = arith.constant 2 : index
    %106 = memref.load %arg3[%c1_45, %c2_46] : memref<2x4xf32, #tpu.memory_space<smem>>
    %107 = vector.extract_strided_slice %48 {offsets = [32, 0], sizes = [16, 18], strides = [1, 1]} : vector<64x18xf32> to vector<16x18xf32>
    %108 = vector.broadcast %106 : f32 to vector<16x18xf32>
    %109 = arith.mulf %108, %107 : vector<16x18xf32>
    %110 = arith.addf %105, %109 : vector<16x18xf32>
    %c1_47 = arith.constant 1 : index
    %c3_48 = arith.constant 3 : index
    %111 = memref.load %arg3[%c1_47, %c3_48] : memref<2x4xf32, #tpu.memory_space<smem>>
    %112 = vector.extract_strided_slice %48 {offsets = [48, 0], sizes = [16, 18], strides = [1, 1]} : vector<64x18xf32> to vector<16x18xf32>
    %113 = vector.broadcast %111 : f32 to vector<16x18xf32>
    %114 = arith.mulf %113, %112 : vector<16x18xf32>
    %115 = arith.addf %110, %114 : vector<16x18xf32>
    %cst_49 = arith.constant dense<0.000000e+00> : vector<18x18xf32>
    %116 = tpu.matmul %64, %115, %cst_49 {dimension_numbers = #tpu.dot_dimension_numbers<[1], [0], [0], [1], [0, 0, 1, 1], [], []>} : vector<18x16xf32>, vector<16x18xf32>, vector<18x18xf32> -> vector<18x18xf32>
    %c1_50 = arith.constant 1 : index
    %117 = memref.load %arg4[%c1_50] : memref<2xf32, #tpu.memory_space<smem>>
    %118 = vector.broadcast %117 : f32 to vector<18x18xf32>
    %119 = arith.addf %116, %118 : vector<18x18xf32>
    %c1_51 = arith.constant 1 : index
    %c0_52 = arith.constant 0 : index
    %c0_53 = arith.constant 0 : index
    %120 = vector.load %arg5[%c1_51, %c0_52, %c0_53] : memref<2x18x18xf32, #tpu.memory_space<vmem>>, vector<1x18x18xf32>
    %121 = vector.shape_cast %120 : vector<1x18x18xf32> to vector<18x18xf32>
    %122 = vector.shape_cast %119 : vector<18x18xf32> to vector<1x18x18xf32>
    tpu.vector_store %arg5[%c1_51, %c0_52, %c0_53], %122 {strides = array<i32>} : memref<2x18x18xf32, #tpu.memory_space<vmem>>, vector<1x18x18xf32>,
    return
  }
}

</mosaic_0001>

<bundles_post_ra>
// kernel: model_forward.1
= control target key start
LH: loop header
LB: loop body
LE: loop exit
PB: predicated region body
PF: predicated region fallthrough
CT: control target
= control target key end

     0   :  { %10 = vsyncpa [#allocation3], 0  ;;  %s2049_s0 = inlined_call_operand.hbm [shape: f32[128,16], index: 0, kind: input, shape index: {}]   ;;  %s2050_s1 = inlined_call_operand.vmem [shape: f32[8,18], index: 1, kind: input, shape index: {}]   ;;  %s2051_s2 = inlined_call_operand.vmem [shape: f32[1,18], index: 2, kind: input, shape index: {}]   ;;  %s2052_s3 = inlined_call_operand.vmem [shape: f32[2,4], index: 3, kind: input, shape index: {}]   ;;  %s2053_s4 = inlined_call_operand.vmem [shape: f32[2], index: 4, kind: input, shape index: {}]   ;;  %s2054_s5 = inlined_call_operand.vmem [shape: f32[2,18,18], index: 5, kind: output, shape index: {}]  }
   0x1   :  { %11 = vsyncpa [#allocation4], 0 }
   0x2   :  { %12 = vsyncpa [#allocation7], 0  ;;  %s1728_s18 = smov [#allocation2]   ;;  %s35_s22 = sshll.u32 %s2052_s3, 4  ;;  %s36_s22 = int_to_ptr.vmem [resolvable:$true] %s35_s22 }
   0x3   :  { %s18_s19 = sshll.u32 %s1728_s18, 4  ;;  %s19_s19 = int_to_ptr.vmem [resolvable:$true] %s18_s19 }
   0x4   :  { %s1686_s23 = scalar_lea.vmem %s19_s19, 2048  ;;  %p1691_p1 = scmp.lt.s32.totalorder %s19_s19, %s19_s19 }
   0x5   :  { %p1687_p0 = scmp.ne.s32.totalorder %s19_s19, %s1686_s23  ;;  %p1692_p2 = scmp.lt.s32.totalorder %s1686_s23, %s1686_s23 }
   0x7   :  { %p1693_p3 = por %p1692_p2, %p1691_p1 }
   0x9   :  { %p1694_p4 = pnand %p1693_p3, %p1687_p0 }
   0xb   :  { %1697 = shalt.err (!%p1694_p4)
}
   0xc   :  { %s1729_s24 = smov 128   ;;  %s1730_s25 = smov 8  }
   0xd   :  { %24 = dma.hbm_to_vmem [thread:$0]  %s2049_s0, 2048, %s19_s19, [#allocation3], %s1729_s24, %s1729_s24, %s1730_s25  }
   0xe   :  { %s1698_s28 = scalar_lea.vmem %s36_s22, 32  ;;  %p1703_p6 = scmp.lt.s32.totalorder %s36_s22, %s36_s22 }
   0xf   :  { %p1699_p5 = scmp.ne.s32.totalorder %s36_s22, %s1698_s28  ;;  %p1704_p7 = scmp.lt.s32.totalorder %s1698_s28, %s1698_s28 }
  0x11   :  { %p1705_p8 = por %p1704_p7, %p1703_p6 }
  0x13   :  { %p1706_p9 = pnand %p1705_p8, %p1699_p5 }
  0x15   :  { %1709 = shalt.err (!%p1706_p9)
}
  0x16   :  { %s1731_s3 = smov [#allocation5]   ;;  %s45_s6 = sshll.u32 %s2053_s4, 4  ;;  %s46_s6 = int_to_ptr.vmem [resolvable:$true] %s45_s6 }
  0x17   :  { %38 = dma.vmem_to_smem %s36_s22, 32, %s1731_s3, [#allocation4]  }
  0x18   :  { %s1710_s7 = scalar_lea.vmem %s46_s6, 16  ;;  %p1715_p11 = scmp.lt.s32.totalorder %s46_s6, %s46_s6 }
  0x19   :  { %p1711_p10 = scmp.ne.s32.totalorder %s46_s6, %s1710_s7  ;;  %p1716_p12 = scmp.lt.s32.totalorder %s1710_s7, %s1710_s7 }
  0x1b   :  { %p1717_p13 = por %p1716_p12, %p1715_p11 }
  0x1d   :  { %p1718_p0 = pnand %p1717_p13, %p1711_p10 }
  0x1f   :  { %1721 = shalt.err (!%p1718_p0)
}
  0x20   :  { %s1732_s0 = smov [#allocation6]  }
  0x21   :  { %48 = dma.vmem_to_smem %s46_s6, 16, %s1732_s0, [#allocation7]  }
  0x22   :  { %1722 = dma.done.wait [#allocation3], 2048  }
  0x23   :  { %1723 = vsyncadd [#allocation3], 4294965248 }
  0x24   :  { %1724 = dma.done.wait [#allocation4], 32  }
  0x25   :  { %1725 = vsyncadd [#allocation4], 4294967264 }
  0x26   :  { %1726 = dma.done.wait [#allocation7], 16  }
  0x27   :  { %1727 = vsyncadd [#allocation7], 4294967280 }
  0x28   :  { %58 = sfence }
  0x29   :  { %v75_v0 = vlaneseq  ;;  %v1775_v1 = vld [vmem:[#allocation2] sm:$0xff]  ;;  %vm90_vm0 = vcmask 130048   ;;  %v1733_v7 = vmov 1.0   ;;  %v1794_v8 = vld [vmem:[#allocation2 + $0x8] sm:$0xff]  ;;  %v1799_v9 = vld [vmem:[#allocation2 + $0x10] sm:$0xff]  ;;  %s1975_s10 = sld [smem:[#allocation5]] }
  0x2a   :  { %1476 = vmatprep.mubr.msk.f32.mxu0 %vm90_vm0, %v1775_v1  ;;  %1504 = vmatprep.mubr.msk.f32.mxu1 %vm90_vm0, %v1775_v1  ;;  %v1809_v10 = vld [vmem:[#allocation2 + $0x18] sm:$0xff]  ;;  %v63_v11 = vld [vmem:[#allocation2 + $0x20] sm:$0xff]  ;;  %v64_v12 = vld [vmem:[#allocation2 + $0x28] sm:$0xff]  ;;  %s1977_s11 = sld [smem:[#allocation5 + $0x80]] }
  0x2b   :  { %v1781_v2 = vshrl.u32 %v75_v0, 7  ;;  %v1783_v3 = vand.u32 127, %v75_v0  ;;  %v65_v13 = vld [vmem:[#allocation2 + $0x30] sm:$0xff]  ;;  %v66_v14 = vld [vmem:[#allocation2 + $0x38] sm:$0xff]  ;;  %v67_v15 = vld [vmem:[#allocation2 + $0x40] sm:$0xff]  ;;  %s1979_s12 = sld [smem:[#allocation5 + $0x1]] }
  0x2c   :  { %v68_v16 = vld [vmem:[#allocation2 + $0x48] sm:$0xff]  ;;  %v69_v17 = vld [vmem:[#allocation2 + $0x50] sm:$0xff]  ;;  %v70_v18 = vld [vmem:[#allocation2 + $0x58] sm:$0xff]  ;;  %s1981_s13 = sld [smem:[#allocation5 + $0x81]] }
  0x2d   :  { %v1786_v4 = vadd.s32 8, %v1781_v2  ;;  %v80_v5 = vmul.u32 2, %v1783_v3  ;;  %v71_v19 = vld [vmem:[#allocation2 + $0x60] sm:$0xff]  ;;  %v72_v20 = vld [vmem:[#allocation2 + $0x68] sm:$0xff]  ;;  %v73_v21 = vld [vmem:[#allocation2 + $0x70] sm:$0xff]  ;;  %v451_v23 = vmul.u32 2, %v1781_v2 }
  0x2e   :  { %v74_v22 = vld [vmem:[#allocation2 + $0x78] sm:$0xff]  ;;  %s1983_s14 = sld [smem:[#allocation5 + $0x2]] }
  0x2f   :  { %vm82_vm1 = vcmp.eq.s32.totalorder %v1786_v4, %v80_v5  ;;  %vm81_vm2 = vcmp.eq.s32.totalorder %v1781_v2, %v80_v5  ;;  %v85_v6 = vadd.s32 1, %v80_v5  ;;  %v475_v24 = vadd.s32 1, %v451_v23  ;;  %s1985_s15 = sld [smem:[#allocation5 + $0x82]] }
  0x30   :  { %1472 = vmatprep.subr.msk.mxu0 %vm82_vm1, %v1733_v7  ;;  %vm459_vm5 = vcmp.eq.s32.totalorder %v1783_v3, %v451_v23  ;;  %s1995_s16 = sld [smem:[#allocation5 + $0x83]] }
  0x31   :  { %1473 = vmatpush3.msk.msra.mxu0 %vm82_vm1, %v1733_v7  ;;  %vm87_vm3 = vcmp.eq.s32.totalorder %v1786_v4, %v85_v6  ;;  %vm86_vm4 = vcmp.eq.s32.totalorder %v1781_v2, %v85_v6  ;;  %vm483_vm6 = vcmp.eq.s32.totalorder %v1783_v3, %v475_v24  ;;  %s989_s17 = sld [smem:[#allocation6]] }
  0x32   :  { %1474 = vmatprep.subr.msk.mxu0 %vm81_vm2, %v1733_v7  ;;  %1500 = vmatprep.subr.msk.mxu1 %vm87_vm3, %v1733_v7  ;;  %s1354_s18 = sld [smem:[#allocation6 + $0x1]] }
  0x33   :  { %1475 = vmatpush3.msk.msra.mxu0 %vm81_vm2, %v1733_v7  ;;  %1501 = vmatpush3.msk.msra.mxu1 %vm87_vm3, %v1733_v7 }
  0x34   :  { %1477 = vmatmul.mubr.msk.f32.vlgmr.msra.gmra.mxu0 %vm90_vm0, %v1794_v8  ;;  %1502 = vmatprep.subr.msk.mxu1 %vm86_vm4, %v1733_v7 }
  0x35   :  { %1503 = vmatpush3.msk.msra.mxu1 %vm86_vm4, %v1733_v7  ;;  %1479 = vmatprep.mubr.msk.f32.mxu0 %vm90_vm0, %v1799_v9 }
  0x36   :  { %1505 = vmatmul.mubr.msk.f32.vlgmr.msra.gmra.mxu1 %vm90_vm0, %v1794_v8 }
  0x37   :  { %1507 = vmatprep.mubr.msk.f32.mxu1 %vm90_vm0, %v1799_v9 }
  0x38   :  { %1480 = vmatmul.mubr.msk.f32.gmra.mxu0 %vm90_vm0, %v1809_v10 }
  0x39   :  { %1482 = vmatprep.mubr.msk.f32.mxu0 %vm90_vm0, %v63_v11 }
  0x3a   :  { %1508 = vmatmul.mubr.msk.f32.gmra.mxu1 %vm90_vm0, %v1809_v10 }
  0x3b   :  { %1510 = vmatprep.mubr.msk.f32.mxu1 %vm90_vm0, %v63_v11 }
  0x3c   :  { %1483 = vmatmul.mubr.msk.f32.gmra.mxu0 %vm90_vm0, %v64_v12 }
  0x3d   :  { %1485 = vmatprep.mubr.msk.f32.mxu0 %vm90_vm0, %v65_v13 }
  0x3e   :  { %1511 = vmatmul.mubr.msk.f32.gmra.mxu1 %vm90_vm0, %v64_v12  ;;  %v1875_v12 = vadd.s32 16, %v1781_v2 }
  0x3f   :  { %1513 = vmatprep.mubr.msk.f32.mxu1 %vm90_vm0, %v65_v13 }
  0x40   :  { %1486 = vmatmul.mubr.msk.f32.gmra.mxu0 %vm90_vm0, %v66_v14 }
  0x41   :  { %1488 = vmatprep.mubr.msk.f32.mxu0 %vm90_vm0, %v67_v15 }
  0x42   :  { %1514 = vmatmul.mubr.msk.f32.gmra.mxu1 %vm90_vm0, %v66_v14  ;;  %v452_v14 = vmul.u32 2, %v1786_v4 }
  0x43   :  { %1516 = vmatprep.mubr.msk.f32.mxu1 %vm90_vm0, %v67_v15  ;;  %v446_v15 = vadd.s32 24, %v1781_v2 }
  0x44   :  { %1489 = vmatmul.mubr.msk.f32.gmra.mxu0 %vm90_vm0, %v68_v16  ;;  %vm460_vm7 = vcmp.eq.s32.totalorder %v1783_v3, %v452_v14 }
  0x45   :  { %1491 = vmatprep.mubr.msk.f32.mxu0 %vm90_vm0, %v69_v17 }
  0x46   :  { %1517 = vmatmul.mubr.msk.f32.gmra.mxu1 %vm90_vm0, %v68_v16 }
  0x47   :  { %1519 = vmatprep.mubr.msk.f32.mxu1 %vm90_vm0, %v69_v17  ;;  %v453_v17 = vmul.u32 2, %v1875_v12 }
  0x48   :  { %1492 = vmatmul.mubr.msk.f32.gmra.mxu0 %vm90_vm0, %v70_v18 }
  0x49   :  { %1494 = vmatprep.mubr.msk.f32.mxu0 %vm90_vm0, %v71_v19  ;;  %v477_v24 = vadd.s32 1, %v453_v17  ;;  %vm461_vm9 = vcmp.eq.s32.totalorder %v1783_v3, %v453_v17 }
  0x4a   :  { %1520 = vmatmul.mubr.msk.f32.gmra.mxu1 %vm90_vm0, %v70_v18  ;;  %v447_v18 = vadd.s32 32, %v1781_v2 }
  0x4b   :  { %1522 = vmatprep.mubr.msk.f32.mxu1 %vm90_vm0, %v71_v19  ;;  %vm485_vm10 = vcmp.eq.s32.totalorder %v1783_v3, %v477_v24 }
  0x4c   :  { %1495 = vmatmul.mubr.msk.f32.gmra.mxu0 %vm90_vm0, %v72_v20 }
  0x4d   :  { %1497 = vmatprep.mubr.msk.f32.mxu0 %vm90_vm0, %v73_v21 }
  0x4e   :  { %1523 = vmatmul.mubr.msk.f32.gmra.mxu1 %vm90_vm0, %v72_v20  ;;  %v476_v20 = vadd.s32 1, %v452_v14 }
  0x4f   :  { %1525 = vmatprep.mubr.msk.f32.mxu1 %vm90_vm0, %v73_v21  ;;  %v454_v21 = vmul.u32 2, %v446_v15 }
  0x50   :  { %1498 = vmatmul.mubr.msk.f32.gmra.mxu0 %vm90_vm0, %v74_v22  ;;  %vm484_vm8 = vcmp.eq.s32.totalorder %v1783_v3, %v476_v20  ;;  %v893_v20 = vstv %s1975_s10 }
  0x51   :  { %1560 = vmatprep.mubr.msk.f32.mxu0 %vm459_vm5, %v1733_v7  ;;  %vm462_vm11 = vcmp.eq.s32.totalorder %v1783_v3, %v454_v21 }
  0x52   :  { %1526 = vmatmul.mubr.msk.f32.gmra.mxu1 %vm90_vm0, %v74_v22  ;;  %v448_v22 = vadd.s32 40, %v1781_v2 }
  0x53   :  { %1604 = vmatprep.mubr.msk.f32.mxu1 %vm483_vm6, %v1733_v7 }
  0xf4   :  { %v1848_v25 = vpop.f32.mrf.mxu0 }
  0xf6   :  { %v1850_v26 = vpop.f32.mrf.mxu0  ;;  %v1852_v27 = vpop.f32.mrf.mxu1 }
  0xf7   :  { %v430_v23 = vmax.f32 %v1848_v25, %v1852_v27  ;;  %v478_v25 = vadd.s32 1, %v454_v21  ;;  %v456_v27 = vmul.u32 2, %v448_v22  ;;  %v1086_v21 = vstv %s1977_s11 }
  0xf8   :  { %v1854_v28 = vpop.f32.mrf.mxu0  ;;  %v1856_v29 = vpop.f32.mrf.mxu1 }
  0xf9   :  { %vm486_vm12 = vcmp.eq.s32.totalorder %v1783_v3, %v478_v25  ;;  %vm464_vm15 = vcmp.eq.s32.totalorder %v1783_v3, %v456_v27 }
  0xfa   :  { %v1858_v30 = vpop.f32.mrf.mxu0  ;;  %v1860_v31 = vpop.f32.mrf.mxu1 }
  0xfb   :  { %v432_v16 = vmax.f32 %v1854_v28, %v1860_v31  ;;  %v455_v28 = vmul.u32 2, %v447_v18  ;;  %v449_v31 = vadd.s32 48, %v1781_v2 }
  0xfc   :  { %v1862_v32 = vpop.f32.mrf.mxu0  ;;  %v1864_v33 = vpop.f32.mrf.mxu1 }
  0xfd   :  { %v431_v19 = vmax.f32 %v1858_v30, %v1864_v33  ;;  %v429_v30 = vmax.f32 %v1850_v26, %v1856_v29  ;;  %v479_v33 = vadd.s32 1, %v455_v28  ;;  %v457_v26 = vmul.u32 2, %v449_v31 }
  0xfe   :  { %v1866_v34 = vpop.f32.mrf.mxu0  ;;  %v1868_v35 = vpop.f32.mrf.mxu1  ;;  %v480_v29 = vadd.s32 1, %v456_v27  ;;  %vm463_vm13 = vcmp.eq.s32.totalorder %v1783_v3, %v455_v28  ;;  %v972_v28 = vstv %s1979_s12  ;;  %v1165_v27 = vstv %s1981_s13 }
  0xff   :  { %v434_v11 = vmax.f32 %v1862_v32, %v1868_v35  ;;  %v450_v32 = vadd.s32 56, %v1781_v2  ;;  %vm487_vm14 = vcmp.eq.s32.totalorder %v1783_v3, %v479_v33  ;;  %v481_v35 = vadd.s32 1, %v457_v26 }
 0x100   :  { %v1487_v36 = vpop.f32.mrf.mxu0  ;;  %v1870_v37 = vpop.f32.mrf.mxu1  ;;  %vm488_vm1 = vcmp.eq.s32.totalorder %v1783_v3, %v480_v29  ;;  %vm465_vm2 = vcmp.eq.s32.totalorder %v1783_v3, %v457_v26  ;;  %v978_v29 = vstv %s1983_s14 }
 0x101   :  { %v433_v13 = vmax.f32 %v1866_v34, %v1870_v37  ;;  %v458_v34 = vmul.u32 2, %v450_v32  ;;  %vm489_vm3 = vcmp.eq.s32.totalorder %v1783_v3, %v481_v35  ;;  %v717_v37 = vld [vmem:[%s2050_s1] sm:$0xff] }
 0x102   :  { %v235_v38 = vpop.f32.mrf.mxu0  ;;  %v1515_v39 = vpop.f32.mrf.mxu1 }
 0x103   :  { %v436_v5 = vmax.f32 %v1487_v36, %v1515_v39  ;;  %v482_v36 = vadd.s32 1, %v458_v34  ;;  %vm466_vm4 = vcmp.eq.s32.totalorder %v1783_v3, %v458_v34  ;;  %v1171_v34 = vstv %s1985_s15 }
 0x104   :  { %v1490_v40 = vpop.f32.mrf.mxu0  ;;  %v380_v41 = vpop.f32.mrf.mxu1 }
 0x105   :  { %v435_v6 = vmax.f32 %v235_v38, %v380_v41  ;;  %vm490_vm5 = vcmp.eq.s32.totalorder %v1783_v3, %v482_v36  ;;  %v880_v38 = vadd.s32 1, %v1786_v4  ;;  %v879_v41 = vadd.s32 1, %v1781_v2 }
 0x106   :  { %v245_v42 = vpop.f32.mrf.mxu0  ;;  %v1518_v43 = vpop.f32.mrf.mxu1 }
 0x107   :  { %v438_v63 = vmax.f32 %v1490_v40, %v1518_v43  ;;  %vm882_vm6 = vcmp.eq.s32.totalorder %v1783_v3, %v880_v38 }
 0x108   :  { %v1493_v44 = vpop.f32.mrf.mxu0  ;;  %v390_v45 = vpop.f32.mrf.mxu1 }
 0x109   :  { %v437_v0 = vmax.f32 %v245_v42, %v390_v45 }
 0x10a   :  { %v255_v46 = vpop.f32.mrf.mxu0  ;;  %v1521_v47 = vpop.f32.mrf.mxu1 }
 0x10b   :  { %v440_v61 = vmax.f32 %v1493_v44, %v1521_v47 }
 0x10c   :  { %v1496_v48 = vpop.f32.mrf.mxu0  ;;  %v400_v49 = vpop.f32.mrf.mxu1 }
 0x10d   :  { %v439_v62 = vmax.f32 %v255_v46, %v400_v49 }
 0x10e   :  { %v265_v50 = vpop.f32.mrf.mxu0  ;;  %v1524_v51 = vpop.f32.mrf.mxu1 }
 0x10f   :  { %v442_v59 = vmax.f32 %v1496_v48, %v1524_v51 }
 0x110   :  { %v1499_v52 = vpop.f32.mrf.mxu0  ;;  %v410_v53 = vpop.f32.mrf.mxu1 }
 0x111   :  { %v441_v60 = vmax.f32 %v265_v50, %v410_v53 }
 0x112   :  { %v1527_v54 = vpop.f32.mrf.mxu1  ;;  %v275_v56 = vpop.f32.mrf.mxu0 }
 0x113   :  { %v444_v55 = vmax.f32 %v1499_v52, %v1527_v54 }
 0x114   :  { %v420_v57 = vpop.f32.mrf.mxu1 }
 0x115   :  { %v443_v58 = vmax.f32 %v275_v56, %v420_v57  ;;  %1528 = vmatprep.subr.mxu0 %v444_v55  ;;  %1572 = vmatprep.subr.mxu1 %v444_v55 }
 0x116   :  { %1529 = vmatpush3.msra.mxu0 %v444_v55  ;;  %1573 = vmatpush3.msra.mxu1 %v444_v55 }
 0x117   :  { %1530 = vmatprep.subr.mxu0 %v443_v58  ;;  %1574 = vmatprep.subr.mxu1 %v443_v58 }
 0x118   :  { %1531 = vmatpush3.msra.mxu0 %v443_v58  ;;  %1575 = vmatpush3.msra.mxu1 %v443_v58 }
 0x119   :  { %1532 = vmatprep.subr.mxu0 %v442_v59  ;;  %1576 = vmatprep.subr.mxu1 %v442_v59 }
 0x11a   :  { %1533 = vmatpush3.msra.mxu0 %v442_v59  ;;  %1577 = vmatpush3.msra.mxu1 %v442_v59 }
 0x11b   :  { %1534 = vmatprep.subr.mxu0 %v441_v60  ;;  %1578 = vmatprep.subr.mxu1 %v441_v60 }
 0x11c   :  { %1535 = vmatpush3.msra.mxu0 %v441_v60  ;;  %1579 = vmatpush3.msra.mxu1 %v441_v60 }
 0x11d   :  { %1536 = vmatprep.subr.mxu0 %v440_v61  ;;  %1580 = vmatprep.subr.mxu1 %v440_v61 }
 0x11e   :  { %1537 = vmatpush3.msra.mxu0 %v440_v61  ;;  %1581 = vmatpush3.msra.mxu1 %v440_v61 }
 0x11f   :  { %1538 = vmatprep.subr.mxu0 %v439_v62  ;;  %1582 = vmatprep.subr.mxu1 %v439_v62 }
 0x120   :  { %1539 = vmatpush3.msra.mxu0 %v439_v62  ;;  %1583 = vmatpush3.msra.mxu1 %v439_v62 }
 0x121   :  { %1540 = vmatprep.subr.mxu0 %v438_v63  ;;  %1584 = vmatprep.subr.mxu1 %v438_v63 }
 0x122   :  { %1541 = vmatpush3.msra.mxu0 %v438_v63  ;;  %1585 = vmatpush3.msra.mxu1 %v438_v63 }
 0x123   :  { %1542 = vmatprep.subr.mxu0 %v437_v0  ;;  %1586 = vmatprep.subr.mxu1 %v437_v0 }
 0x124   :  { %1543 = vmatpush3.msra.mxu0 %v437_v0  ;;  %1587 = vmatpush3.msra.mxu1 %v437_v0 }
 0x125   :  { %1544 = vmatprep.subr.mxu0 %v436_v5  ;;  %1588 = vmatprep.subr.mxu1 %v436_v5 }
 0x126   :  { %1545 = vmatpush3.msra.mxu0 %v436_v5  ;;  %1589 = vmatpush3.msra.mxu1 %v436_v5 }
 0x127   :  { %1546 = vmatprep.subr.mxu0 %v435_v6  ;;  %1590 = vmatprep.subr.mxu1 %v435_v6 }
 0x128   :  { %1547 = vmatpush3.msra.mxu0 %v435_v6  ;;  %1591 = vmatpush3.msra.mxu1 %v435_v6 }
 0x129   :  { %1548 = vmatprep.subr.mxu0 %v434_v11  ;;  %1592 = vmatprep.subr.mxu1 %v434_v11 }
 0x12a   :  { %1549 = vmatpush3.msra.mxu0 %v434_v11  ;;  %1593 = vmatpush3.msra.mxu1 %v434_v11 }
 0x12b   :  { %1550 = vmatprep.subr.mxu0 %v433_v13  ;;  %1594 = vmatprep.subr.mxu1 %v433_v13 }
 0x12c   :  { %1551 = vmatpush3.msra.mxu0 %v433_v13  ;;  %1595 = vmatpush3.msra.mxu1 %v433_v13 }
 0x12d   :  { %1552 = vmatprep.subr.mxu0 %v432_v16  ;;  %1596 = vmatprep.subr.mxu1 %v432_v16 }
 0x12e   :  { %1553 = vmatpush3.msra.mxu0 %v432_v16  ;;  %1597 = vmatpush3.msra.mxu1 %v432_v16 }
 0x12f   :  { %1554 = vmatprep.subr.mxu0 %v431_v19  ;;  %1598 = vmatprep.subr.mxu1 %v431_v19 }
 0x130   :  { %1555 = vmatpush3.msra.mxu0 %v431_v19  ;;  %1599 = vmatpush3.msra.mxu1 %v431_v19 }
 0x131   :  { %1556 = vmatprep.subr.mxu0 %v430_v23  ;;  %1600 = vmatprep.subr.mxu1 %v430_v23 }
 0x132   :  { %1557 = vmatpush3.msra.mxu0 %v430_v23  ;;  %1601 = vmatpush3.msra.mxu1 %v430_v23 }
 0x133   :  { %1558 = vmatprep.subr.mxu0 %v429_v30  ;;  %1602 = vmatprep.subr.mxu1 %v429_v30 }
 0x134   :  { %1559 = vmatpush3.msra.mxu0 %v429_v30  ;;  %1603 = vmatpush3.msra.mxu1 %v429_v30 }
 0x135   :  { %1561 = vmatmul.mubr.msk.f32.vlgmr.msra.gmra.mxu0 %vm460_vm7, %v1733_v7  ;;  %1605 = vmatmul.mubr.msk.f32.vlgmr.msra.gmra.mxu1 %vm484_vm8, %v1733_v7  ;;  %vm725_vm7 = vcmask 64512   ;;  %vm881_vm8 = vcmp.eq.s32.totalorder %v1783_v3, %v879_v41 }
 0x136   :  { %1563 = vmatprep.mubr.msk.f32.mxu0 %vm461_vm9, %v1733_v7  ;;  %1607 = vmatprep.mubr.msk.f32.mxu1 %vm485_vm10, %v1733_v7  ;;  %vm1735_vm9 = vmmov 0  }
 0x137   :  { %1616 = vmatprep.subr.mxu0 %v717_v37 }
 0x138   :  { %1617 = vmatpush3.msra.mxu0 %v717_v37 }
 0x139   :  { %1564 = vmatmul.mubr.msk.f32.gmra.mxu0 %vm462_vm11, %v1733_v7  ;;  %1608 = vmatmul.mubr.msk.f32.gmra.mxu1 %vm486_vm12, %v1733_v7 }
 0x13a   :  { %1566 = vmatprep.mubr.msk.f32.mxu0 %vm463_vm13, %v1733_v7  ;;  %1610 = vmatprep.mubr.msk.f32.mxu1 %vm487_vm14, %v1733_v7 }
 0x13b   :  { %1630 = vmatprep.subr.msk.mxu0 %vm882_vm6, %v1733_v7 }
 0x13d   :  { %1567 = vmatmul.mubr.msk.f32.gmra.mxu0 %vm464_vm15, %v1733_v7  ;;  %1611 = vmatmul.mubr.msk.f32.gmra.mxu1 %vm488_vm1, %v1733_v7 }
 0x13e   :  { %1569 = vmatprep.mubr.msk.f32.mxu0 %vm465_vm2, %v1733_v7  ;;  %1613 = vmatprep.mubr.msk.f32.mxu1 %vm489_vm3, %v1733_v7 }
 0x141   :  { %1570 = vmatmul.mubr.msk.f32.gmra.mxu0 %vm466_vm4, %v1733_v7  ;;  %1614 = vmatmul.mubr.msk.f32.gmra.mxu1 %vm490_vm5, %v1733_v7 }
 0x1f5   :  { %v1562_v39 = vpop.f32.mrf.mxu0  ;;  %v1606_v40 = vpop.f32.mrf.mxu1 }
 0x1f6   :  { %v710_v45 = vmax.f32 %v1562_v39, %v1606_v40 }
 0x1f7   :  { %v565_v42 = vpop.f32.mrf.mxu0  ;;  %v670_v43 = vpop.f32.mrf.mxu1 }
 0x1f8   :  { %v709_v44 = vmax.f32 %v565_v42, %v670_v43 }
 0x1f9   :  { %v1565_v46 = vpop.f32.mrf.mxu0  ;;  %v1609_v47 = vpop.f32.mrf.mxu1 }
 0x1fa   :  { %1618 = vmatprep.mubr.msk.f32.mxu0 %vm725_vm7, %v709_v44  ;;  %v712_v51 = vmax.f32 %v1565_v46, %v1609_v47  ;;  %v885_v44 = vadd.s32 1, %v1783_v3 }
 0x1fb   :  { %v575_v48 = vpop.f32.mrf.mxu0  ;;  %v680_v49 = vpop.f32.mrf.mxu1  ;;  %1619 = vmatmul.mubr.msk.f32.vlgmr.msra.gmra.mxu0 %vm725_vm7, %v710_v45 }
 0x1fc   :  { %v711_v50 = vmax.f32 %v575_v48, %v680_v49  ;;  %1631 = vmatpush3.msk.msra.mxu0 %vm882_vm6, %v1733_v7  ;;  %vm886_vm3 = vcmp.eq.s32.totalorder %v1781_v2, %v885_v44  ;;  %vm887_vm4 = vcmp.eq.s32.totalorder %v1786_v4, %v885_v44  ;;  %vm888_vm5 = vcmp.eq.s32.totalorder %v1875_v12, %v885_v44 }
 0x1fd   :  { %v1568_v52 = vpop.f32.mrf.mxu0  ;;  %v1612_v53 = vpop.f32.mrf.mxu1  ;;  %1632 = vmatprep.subr.msk.mxu0 %vm881_vm8, %v1733_v7  ;;  %v990_v12 = vstv %s989_s17 }
 0x1fe   :  { %1621 = vmatprep.mubr.msk.f32.mxu0 %vm725_vm7, %v711_v50  ;;  %1633 = vmatpush3.msk.msra.mxu0 %vm881_vm8, %v1733_v7  ;;  %v714_v57 = vmax.f32 %v1568_v52, %v1612_v53 }
 0x1ff   :  { %v585_v54 = vpop.f32.mrf.mxu0  ;;  %v690_v55 = vpop.f32.mrf.mxu1  ;;  %1622 = vmatmul.mubr.msk.f32.gmra.mxu0 %vm725_vm7, %v712_v51  ;;  %1650 = vmatprep.subr.msk.mxu0 %vm882_vm6, %v1733_v7 }
 0x200   :  { %v713_v56 = vmax.f32 %v585_v54, %v690_v55 }
 0x201   :  { %v1571_v58 = vpop.f32.mrf.mxu0  ;;  %v1615_v59 = vpop.f32.mrf.mxu1 }
 0x202   :  { %1624 = vmatprep.mubr.msk.f32.mxu0 %vm725_vm7, %v713_v56  ;;  %v716_v63 = vmax.f32 %v1571_v58, %v1615_v59 }
 0x203   :  { %v595_v60 = vpop.f32.mrf.mxu0  ;;  %v700_v61 = vpop.f32.mrf.mxu1  ;;  %1625 = vmatmul.mubr.msk.f32.gmra.mxu0 %vm725_vm7, %v714_v57 }
 0x204   :  { %v715_v62 = vmax.f32 %v595_v60, %v700_v61 }
 0x206   :  { %1627 = vmatprep.mubr.msk.f32.mxu0 %vm725_vm7, %v715_v62 }
 0x207   :  { %1628 = vmatmul.mubr.msk.f32.gmra.mxu0 %vm725_vm7, %v716_v63 }
 0x208   :  { %1634 = vmatprep.mubr.msk.f32.mxu0 %vm90_vm0, %v1775_v1  ;;  %v1734_v1 = vmov 0.0  }
 0x209   :  { %1637 = vmatprep.subr.mxu1 %v1734_v1  ;;  %1641 = vmatprep.mubr.msk.f32.mxu1 %vm1735_vm9, %v1734_v1  ;;  %v891_v4 = vsel %vm888_vm5, 1.0, %v1734_v1 }
 0x20b   :  { %1635 = vmatmul.mubr.msk.f32.vlgmr.msra.gmra.mxu0 %vm90_vm0, %v1794_v8 }
 0x20c   :  { %1651 = vmatpush3.msk.msra.mxu0 %vm882_vm6, %v1733_v7  ;;  %1654 = vmatprep.mubr.msk.f32.mxu0 %vm90_vm0, %v1799_v9  ;;  %v1327_v9 = vld [vmem:[%s2051_s2] ss:$0 sm:$0xff]  ;;  %s1987_s2 = sld [smem:[#allocation5 + $0x3]]  ;;  %vm1080_vm6 = vcmask 146432  }
 0x20d   :  { %1652 = vmatprep.subr.msk.mxu0 %vm881_vm8, %v1733_v7 }
 0x20e   :  { %1653 = vmatpush3.msk.msra.mxu0 %vm881_vm8, %v1733_v7 }
 0x20f   :  { %1655 = vmatmul.mubr.msk.f32.vlgmr.msra.gmra.mxu0 %vm90_vm0, %v1809_v10 }
 0x212   :  { %v984_v49 = vstv %s1987_s2 }
 0x2bb   :  { %v1620_v8 = vpop.f32.mrf.mxu0 }
 0x2bc   :  { %v822_v7 = vadd.f32 %v1620_v8, %v1327_v9 }
 0x2bd   :  { %v816_v0 = vpop.f32.mrf.mxu0 }
 0x2be   :  { %v817_v10 = vadd.f32 %v1327_v9, %v816_v0  ;;  %v864_v13 = vmul.f32 0.2, %v822_v7  ;;  %vm856_vm10 = vcmp.gt.f32.partialorder %v822_v7, 0.0 }
 0x2bf   :  { %v1623_v5 = vpop.f32.mrf.mxu0 }
 0x2c0   :  { %v832_v6 = vadd.f32 %v1623_v5, %v1327_v9  ;;  %v863_v15 = vmul.f32 0.2, %v817_v10  ;;  %vm855_vm11 = vcmp.gt.f32.partialorder %v817_v10, 0.0  ;;  %v872_v24 = vsel %vm856_vm10, %v822_v7, %v864_v13 }
 0x2c1   :  { %v826_v11 = vpop.f32.mrf.mxu0  ;;  %v895_v36 = vmul.f32 %v893_v20, %v872_v24  ;;  %v1088_v52 = vmul.f32 %v1086_v21, %v872_v24 }
 0x2c2   :  { %v827_v14 = vadd.f32 %v1327_v9, %v826_v11  ;;  %v866_v17 = vmul.f32 0.2, %v832_v6  ;;  %vm858_vm12 = vcmp.gt.f32.partialorder %v832_v6, 0.0  ;;  %v871_v25 = vsel %vm855_vm11, %v817_v10, %v863_v15 }
 0x2c3   :  { %v1626_v16 = vpop.f32.mrf.mxu0  ;;  %v894_v43 = vmul.f32 %v893_v20, %v871_v25  ;;  %v1087_v60 = vmul.f32 %v1086_v21, %v871_v25  ;;  %v889_v15 = vsel %vm886_vm3, 1.0, %v1734_v1 }
 0x2c4   :  { %v842_v18 = vadd.f32 %v1626_v16, %v1327_v9  ;;  %v865_v22 = vmul.f32 0.2, %v827_v14  ;;  %vm857_vm13 = vcmp.gt.f32.partialorder %v827_v14, 0.0  ;;  %v874_v32 = vsel %vm858_vm12, %v832_v6, %v866_v17 }
 0x2c5   :  { %v836_v19 = vpop.f32.mrf.mxu0  ;;  %v974_v42 = vmul.f32 %v972_v28, %v874_v32  ;;  %v1167_v59 = vmul.f32 %v1165_v27, %v874_v32 }
 0x2c6   :  { %v837_v23 = vadd.f32 %v1327_v9, %v836_v19  ;;  %v868_v31 = vmul.f32 0.2, %v842_v18  ;;  %vm860_vm14 = vcmp.gt.f32.partialorder %v842_v18, 0.0  ;;  %v873_v37 = vsel %vm857_vm13, %v827_v14, %v865_v22 }
 0x2c7   :  { %v1629_v30 = vpop.f32.mrf.mxu0  ;;  %v973_v51 = vmul.f32 %v972_v28, %v873_v37  ;;  %v1166_v10 = vmul.f32 %v1165_v27, %v873_v37 }
 0x2c8   :  { %v867_v33 = vmul.f32 0.2, %v837_v23  ;;  %v852_v26 = vadd.f32 %v1629_v30, %v1327_v9  ;;  %vm859_vm15 = vcmp.gt.f32.partialorder %v837_v23, 0.0  ;;  %v876_v40 = vsel %vm860_vm14, %v842_v18, %v868_v31 }
 0x2c9   :  { %v846_v35 = vpop.f32.mrf.mxu0  ;;  %v980_v53 = vmul.f32 %v978_v29, %v876_v40  ;;  %v1173_v8 = vmul.f32 %v1171_v34, %v876_v40 }
 0x2ca   :  { %vm862_vm1 = vcmp.gt.f32.partialorder %v852_v26, 0.0  ;;  %v870_v38 = vmul.f32 0.2, %v852_v26  ;;  %v847_v39 = vadd.f32 %v1327_v9, %v846_v35  ;;  %v875_v45 = vsel %vm859_vm15, %v837_v23, %v867_v33 }
 0x2cb   :  { %v1636_v41 = vpop.f32.mrf.mxu0  ;;  %v979_v57 = vmul.f32 %v978_v29, %v875_v45  ;;  %v1177_v9 = vstv %s1995_s16  ;;  %v1172_v14 = vmul.f32 %v1171_v34, %v875_v45  ;;  %v890_v23 = vsel %vm887_vm4, 1.0, %v1734_v1 }
 0x2cc   :  { %vm861_vm2 = vcmp.gt.f32.partialorder %v847_v39, 0.0  ;;  %v869_v46 = vmul.f32 0.2, %v847_v39  ;;  %v968_v47 = vadd.f32 %v1636_v41, %v895_v36  ;;  %v878_v48 = vsel %vm862_vm1, %v852_v26, %v870_v38 }
 0x2cd   :  { %v962_v50 = vpop.f32.mrf.mxu0  ;;  %v986_v3 = vmul.f32 %v984_v49, %v878_v48  ;;  %v1179_v16 = vmul.f32 %v1177_v9, %v878_v48  ;;  %v1183_v26 = vstv %s1354_s18 }
 0x2ce   :  { %v877_v54 = vsel %vm861_vm2, %v847_v39, %v869_v46  ;;  %v976_v55 = vadd.f32 %v974_v42, %v968_v47  ;;  %v963_v56 = vadd.f32 %v962_v50, %v894_v43 }
 0x2cf   :  { %v1656_v58 = vpop.f32.mrf.mxu0  ;;  %v985_v0 = vmul.f32 %v984_v49, %v877_v54  ;;  %v1178_v19 = vmul.f32 %v1177_v9, %v877_v54 }
 0x2d0   :  { %v982_v61 = vadd.f32 %v980_v53, %v976_v55  ;;  %v975_v62 = vadd.f32 %v973_v51, %v963_v56  ;;  %v1161_v63 = vadd.f32 %v1656_v58, %v1088_v52 }
 0x2d1   :  { %v1155_v7 = vpop.f32.mrf.mxu0 }
 0x2d2   :  { %v988_v5 = vadd.f32 %v986_v3, %v982_v61  ;;  %v981_v6 = vadd.f32 %v979_v57, %v975_v62  ;;  %v1169_v11 = vadd.f32 %v1167_v59, %v1161_v63  ;;  %v1156_v13 = vadd.f32 %v1155_v7, %v1087_v60 }
 0x2d4   :  { %v987_v17 = vadd.f32 %v985_v0, %v981_v6  ;;  %v1175_v18 = vadd.f32 %v1173_v8, %v1169_v11  ;;  %v1168_v2 = vadd.f32 %v1166_v10, %v1156_v13  ;;  %1638 = vmatpush3.msra.mxu1 %v988_v5 }
 0x2d5   :  { %1639 = vmatprep.subr.mxu1 %v1734_v1 }
 0x2d6   :  { %v1181_v20 = vadd.f32 %v1179_v16, %v1175_v18  ;;  %v1174_v21 = vadd.f32 %v1172_v14, %v1168_v2  ;;  %1640 = vmatpush3.msra.mxu1 %v987_v17 }
 0x2d7   :  { %1657 = vmatprep.subr.mxu1 %v1734_v1  ;;  %1642 = vmatmul.mubr.msk.f32.vlgmr.msra.gmra.mxu1 %vm90_vm0, %v889_v15 }
 0x2d8   :  { %v1180_v22 = vadd.f32 %v1178_v19, %v1174_v21  ;;  %1658 = vmatpush3.msra.mxu1 %v1181_v20  ;;  %1644 = vmatprep.mubr.msk.f32.mxu1 %vm1735_vm9, %v1734_v1 }
 0x2d9   :  { %1659 = vmatprep.subr.mxu1 %v1734_v1 }
 0x2da   :  { %1660 = vmatpush3.msra.mxu1 %v1180_v22 }
 0x2db   :  { %1645 = vmatmul.mubr.msk.f32.gmra.mxu1 %vm90_vm0, %v890_v23 }
 0x2dc   :  { %1647 = vmatprep.mubr.msk.f32.mxu1 %vm1735_vm9, %v1734_v1 }
 0x2df   :  { %1648 = vmatmul.mubr.msk.f32.gmra.mxu1 %vm90_vm0, %v891_v4 }
 0x2e0   :  { %1661 = vmatprep.mubr.msk.f32.mxu1 %vm1735_vm9, %v1734_v1 }
 0x2e3   :  { %1662 = vmatmul.mubr.msk.f32.vlgmr.msra.gmra.mxu1 %vm90_vm0, %v889_v15 }
 0x2e4   :  { %1664 = vmatprep.mubr.msk.f32.mxu1 %vm1735_vm9, %v1734_v1 }
 0x2e7   :  { %1665 = vmatmul.mubr.msk.f32.gmra.mxu1 %vm90_vm0, %v890_v23 }
 0x2e8   :  { %1667 = vmatprep.mubr.msk.f32.mxu1 %vm1735_vm9, %v1734_v1 }
 0x2eb   :  { %1668 = vmatmul.mubr.msk.f32.gmra.mxu1 %vm90_vm0, %v891_v4  ;;  %vm1083_vm0 = vcmask 140288  }
 0x397   :  { %v1066_v24 = vpop.f32.mrf.mxu1 }
 0x398   :  { %v1067_v28 = vadd.f32 %v1066_v24, %v990_v12 }
 0x399   :  { %v1643_v31 = vpop.f32.mrf.mxu1 }
 0x39a   :  { %1081 = vst.msk [vmem:[%s2054_s5] sm:$0xff] %vm1080_vm6, %v1067_v28 }
 0x39b   :  { %v1071_v30 = vpop.f32.mrf.mxu1 }
 0x39c   :  { %v1072_v25 = vadd.f32 %v1071_v30, %v990_v12 }
 0x39d   :  { %v1646_v27 = vpop.f32.mrf.mxu1 }
 0x39e   :  { %1082 = vst.msk [vmem:[%s2054_s5 + $0x8] sm:$0xff] %vm1080_vm6, %v1072_v25 }
 0x39f   :  { %v1076_v1 = vpop.f32.mrf.mxu1 }
 0x3a0   :  { %v1077_v32 = vadd.f32 %v1076_v1, %v990_v12 }
 0x3a1   :  { %v1649_v33 = vpop.f32.mrf.mxu1 }
 0x3a2   :  { %1084 = vst.msk [vmem:[%s2054_s5 + $0x10] sm:$0x3] %vm1083_vm0, %v1077_v32 }
 0x3a3   :  { %v1250_v29 = vpop.f32.mrf.mxu1 }
 0x3a4   :  { %v1251_v34 = vadd.f32 %v1250_v29, %v1183_v26 }
 0x3a5   :  { %v1663_v35 = vpop.f32.mrf.mxu1 }
 0x3a6   :  { %1358 = vst.msk [vmem:[%s2054_s5 + $0x18] sm:$0xff] %vm1080_vm6, %v1251_v34 }
 0x3a7   :  { %v1255_v36 = vpop.f32.mrf.mxu1 }
 0x3a8   :  { %v1256_v37 = vadd.f32 %v1255_v36, %v1183_v26 }
 0x3a9   :  { %v1666_v38 = vpop.f32.mrf.mxu1 }
 0x3aa   :  { %1359 = vst.msk [vmem:[%s2054_s5 + $0x20] sm:$0xff] %vm1080_vm6, %v1256_v37 }
 0x3ab   :  { %v1260_v39 = vpop.f32.mrf.mxu1 }
 0x3ac   :  { %v1261_v40 = vadd.f32 %v1260_v39, %v1183_v26 }
 0x3ad   :  { %v1669_v41 = vpop.f32.mrf.mxu1 }
 0x3ae   :  { %1360 = vst.msk [vmem:[%s2054_s5 + $0x28] sm:$0x3] %vm1083_vm0, %v1261_v40 }
 0x3af   :  { %1272 = vsyncpa [#allocation3], 1 }
 0x3b0   :  { %1273 = vsyncpa [#allocation4], 1 }
 0x3b1   :  { %1274 = vsyncpa [#allocation7], 1 }

</bundles_post_ra>
